<compile_context>
chip_gen: v6e
topology: v6e:2x2x1
jax: 0.10.0
libtpu: 0.0.40
codegen_flags: <defaults>
</compile_context>

<pallas_src>
import functools
import math

import jax
import jax.numpy as jnp
from jax.experimental import pallas as pl
from jax.experimental.pallas import tpu as pltpu


_GELU_C = math.sqrt(2.0 / math.pi)


def _gelu_tanh_f32(h):
    # nn.GELU(approximate='tanh') in f32; tanh lowers to the EUP slot.
    return 0.5 * h * (1.0 + jnp.tanh(_GELU_C * (h + 0.044715 * (h * h * h))))


# ----------------------------------------------------------------------------
# Kernels
# ----------------------------------------------------------------------------

def _mlp_resident_kernel(x_ref, w1_ref, b1_ref, w2_ref, b2_ref, o_ref):
    """Weights-resident path: one grid step per token tile, full hidden dim.

    x_ref  : (TM, C)  activations (any float dtype; cast to bf16 in-kernel)
    w1_ref : (C, H)   bf16 c_fc weight (whole array, VMEM-resident)
    b1_ref : (1, H)   f32
    w2_ref : (H, C)   bf16 c_proj weight (whole array, VMEM-resident)
    b2_ref : (1, C)   f32
    o_ref  : (TM, C)  output tile
    """
    x = x_ref[...].astype(jnp.bfloat16)
    h = jnp.dot(x, w1_ref[...], preferred_element_type=jnp.float32)
    h = _gelu_tanh_f32(h + b1_ref[...])
    out = jnp.dot(h.astype(jnp.bfloat16), w2_ref[...],
                  preferred_element_type=jnp.float32)
    o_ref[...] = (out + b2_ref[...]).astype(o_ref.dtype)


def _mlp_stream_kernel(x_ref, w1_ref, b1_ref, w2_ref, b2_ref, o_ref, *scratch):
    """Streaming path: grid (m, h); hidden axis is the reduction axis.

    If `scratch` is empty the output dtype is f32 and we accumulate directly
    into the VMEM-resident o_ref block; otherwise scratch[0] is an f32
    accumulator cast into o_ref on the last hidden tile.
    """
    acc_ref = scratch[0] if scratch else o_ref
    h_idx = pl.program_id(1)

    @pl.when(h_idx == 0)
    def _():
        acc_ref[...] = jnp.broadcast_to(b2_ref[...], acc_ref.shape)

    x = x_ref[...].astype(jnp.bfloat16)
    h = jnp.dot(x, w1_ref[...], preferred_element_type=jnp.float32)
    h = _gelu_tanh_f32(h + b1_ref[...])
    acc_ref[...] += jnp.dot(h.astype(jnp.bfloat16), w2_ref[...],
                            preferred_element_type=jnp.float32)

    if scratch:
        @pl.when(h_idx == pl.num_programs(1) - 1)
        def _():
            o_ref[...] = acc_ref[...].astype(o_ref.dtype)


# ----------------------------------------------------------------------------
# Tiling / VMEM budgeting helpers
# ----------------------------------------------------------------------------

def _round_up(v, m):
    return ((v + m - 1) // m) * m


@functools.lru_cache(maxsize=1)
def _vmem_capacity_bytes():
    try:
        cap = getattr(pltpu.get_tpu_info(), "vmem_capacity_bytes", None)
        if cap:
            return int(cap)
    except Exception:
        pass
    return 64 * 1024 * 1024  # conservative: v7x per-TensorCore VMEM


def _resident_bytes(TM, C, H, x_bytes, out_bytes):
    wts = 2 * (2 * C * H * 2)          # bf16 W1+W2, assume double-buffered
    act = 2 * TM * C * x_bytes         # x tile, double-buffered
    out = 2 * TM * C * out_bytes       # out tile, double-buffered
    hid = TM * H * (4 + 2)             # f32 hidden + bf16 cast
    return wts + act + out + hid + (1 << 20)


def _stream_bytes(TM, TH, C, x_bytes, out_bytes, use_scratch):
    wts = 2 * (2 * C * TH * 2)
    act = 2 * TM * C * x_bytes
    out = 2 * TM * C * out_bytes
    acc = TM * C * 4 if use_scratch else 0
    hid = TM * TH * (4 + 2)
    return wts + act + out + acc + hid + (1 << 20)


# ----------------------------------------------------------------------------
# Wrapper
# ----------------------------------------------------------------------------

@functools.partial(
    jax.jit,
    static_argnames=("tile_m", "tile_h", "out_dtype", "force_streaming"))
def mlp_forward(x, w1, b1, w2, b2, *, tile_m=None, tile_h=None,
                out_dtype=None, force_streaming=False):
    """Fused c_fc -> tanh-GELU -> c_proj.

    x  : (..., C) activations.
    w1 : (C, 4C), b1: (4C,)   -- c_fc   (column-major vs. torch's (out, in))
    w2 : (4C, C), b2: (C,)    -- c_proj
    Weights should be pre-cast to bf16 once at model setup (the wrapper only
    casts if another dtype is passed).
    """
    orig_shape = x.shape
    C = orig_shape[-1]
    H = w1.shape[1]
    out_dtype = jnp.dtype(out_dtype) if out_dtype is not None else x.dtype

    x2 = x.reshape(-1, C)
    N = x2.shape[0]

    if w1.dtype != jnp.bfloat16:
        w1 = w1.astype(jnp.bfloat16)   # prefer casting once outside the hot path
    if w2.dtype != jnp.bfloat16:
        w2 = w2.astype(jnp.bfloat16)
    b1f = b1.reshape(1, H).astype(jnp.float32)
    b2f = b2.reshape(1, C).astype(jnp.float32)

    x_bytes = jnp.dtype(x.dtype).itemsize
    out_bytes = out_dtype.itemsize

    cap = _vmem_capacity_bytes()
    budget = cap - (8 << 20)           # headroom for compiler-internal scratch

    # ---- token tile (16-row aligned; padded to a tile multiple, no fallback
    #      to one giant block) ----
    TM_PREF = 512
    if tile_m is None:
        n_tiles = -(-N // TM_PREF)
        TM = max(16, _round_up(-(-N // n_tiles), 16))
    else:
        TM = max(8, _round_up(min(tile_m, _round_up(N, 8)), 8))

    # ---- path selection ----
    use_resident = not force_streaming
    if use_resident:
        if tile_m is None:
            while TM > 128 and _resident_bytes(TM, C, H, x_bytes, out_bytes) > budget:
                TM = max(128, TM // 2)
        use_resident = _resident_bytes(TM, C, H, x_bytes, out_bytes) <= budget

    if use_resident:
        use_scratch = False
        TH = H
        footprint = _resident_bytes(TM, C, H, x_bytes, out_bytes)
    else:
        use_scratch = (out_dtype != jnp.dtype(jnp.float32))
        if tile_h is not None and H % tile_h == 0:
            TH = tile_h
        else:
            # TODO(synk): pad H for shapes not divisible by 128 instead of
            # falling back to the full hidden dim (never hit for H = 4*C, C%32==0).
            TH = next((t for t in (512, 256, 128) if H % t == 0), H)
        if tile_m is None:
            while TM > 128 and _stream_bytes(
                    TM, TH, C, x_bytes, out_bytes, use_scratch) > budget:
                TM = max(128, TM // 2)
        footprint = _stream_bytes(TM, TH, C, x_bytes, out_bytes, use_scratch)

    vmem_limit = int(min(cap - (4 << 20), max(32 << 20, footprint + (8 << 20))))

    # ---- pad tokens to a tile multiple ----
    N_pad = _round_up(N, TM)
    if N_pad != N:
        x2 = jnp.pad(x2, ((0, N_pad - N), (0, 0)))
    grid_m = N_pad // TM

    if use_resident:
        grid_spec = pltpu.PrefetchScalarGridSpec(
            num_scalar_prefetch=0,
            grid=(grid_m,),
            in_specs=[
                pl.BlockSpec((TM, C), lambda m: (m, 0)),   # x tile
                pl.BlockSpec((C, H), lambda m: (0, 0)),    # W1 (resident)
                pl.BlockSpec((1, H), lambda m: (0, 0)),    # b1
                pl.BlockSpec((H, C), lambda m: (0, 0)),    # W2 (resident)
                pl.BlockSpec((1, C), lambda m: (0, 0)),    # b2
            ],
            out_specs=pl.BlockSpec((TM, C), lambda m: (m, 0)),
        )
        out = pl.pallas_call(
            _mlp_resident_kernel,
            out_shape=jax.ShapeDtypeStruct((N_pad, C), out_dtype),
            grid_spec=grid_spec,
            compiler_params=pltpu.CompilerParams(
                dimension_semantics=("parallel",),
                vmem_limit_bytes=vmem_limit,
            ),
        )(x2, w1, b1f, w2, b2f)
    else:
        scratch = [pltpu.VMEM((TM, C), jnp.float32)] if use_scratch else []
        grid_spec = pltpu.PrefetchScalarGridSpec(
            num_scalar_prefetch=0,
            grid=(grid_m, H // TH),
            in_specs=[
                pl.BlockSpec((TM, C), lambda m, h: (m, 0)),   # x tile (reused over h)
                pl.BlockSpec((C, TH), lambda m, h: (0, h)),   # W1 slice
                pl.BlockSpec((1, TH), lambda m, h: (0, h)),   # b1 slice
                pl.BlockSpec((TH, C), lambda m, h: (h, 0)),   # W2 slice
                pl.BlockSpec((1, C), lambda m, h: (0, 0)),    # b2
            ],
            out_specs=pl.BlockSpec((TM, C), lambda m, h: (m, 0)),
            scratch_shapes=scratch,
        )
        out = pl.pallas_call(
            _mlp_stream_kernel,
            out_shape=jax.ShapeDtypeStruct((N_pad, C), out_dtype),
            grid_spec=grid_spec,
            compiler_params=pltpu.CompilerParams(
                dimension_semantics=("parallel", "arbitrary"),
                vmem_limit_bytes=vmem_limit,
            ),
        )(x2, w1, b1f, w2, b2f)

    if N_pad != N:
        out = out[:N]
    return out.reshape(orig_shape)


# ----------------------------------------------------------------------------
# Pure-JAX reference (f32) for validation
# ----------------------------------------------------------------------------

def mlp_reference(x, w1, b1, w2, b2):
    h = x @ w1 + b1
    h = _gelu_tanh_f32(h)
    return h @ w2 + b2


# ----------------------------------------------------------------------------
# main
# ----------------------------------------------------------------------------

if __name__ == "__main__":
    # Small config consistent with the module: n_embd=64, batch=2, seq=8.
    B, T, C = 2, 8, 64
    H = 4 * C

    key = jax.random.PRNGKey(0)
    kx, k1, k2 = jax.random.split(key, 3)

    std = 0.02
    x = jax.random.normal(kx, (B, T, C), dtype=jnp.float32)
    w1 = std * jax.random.normal(k1, (C, H), dtype=jnp.float32)   # c_fc
    b1 = jnp.zeros((H,), jnp.float32)
    w2 = std * jax.random.normal(k2, (H, C), dtype=jnp.float32)   # c_proj
    b2 = jnp.zeros((C,), jnp.float32)

    # Pre-cast weights to bf16 once, outside the hot path (perf review).
    w1_bf = w1.astype(jnp.bfloat16)
    w2_bf = w2.astype(jnp.bfloat16)

    ref = mlp_reference(x, w1, b1, w2, b2)

    # 1) Weights-resident fast path (what real GPT-2-class sizes take).
    out_res = jax.block_until_ready(mlp_forward(x, w1_bf, b1, w2_bf, b2))

    # 2) Streamed-hidden path, f32 out -> accumulates directly into o_ref
    #    (grid 2x2 exercises both grid axes and the init path).
    out_s32 = jax.block_until_ready(
        mlp_forward(x, w1_bf, b1, w2_bf, b2, tile_m=8, tile_h=128,
                    force_streaming=True))

    # 3) Streamed-hidden path, bf16 out -> f32 VMEM scratch accumulator.
    out_sbf = jax.block_until_ready(
        mlp_forward(x, w1_bf, b1, w2_bf, b2, tile_m=8, tile_h=128,
                    out_dtype=jnp.bfloat16, force_streaming=True))

    for name, out in (("resident", out_res), ("stream_f32", out_s32),
                      ("stream_bf16", out_sbf)):
        assert out.shape == (B, T, C), (name, out.shape)
        out32 = out.astype(jnp.float32)
        assert bool(jnp.all(jnp.isfinite(out32))), name
        err = float(jnp.max(jnp.abs(out32 - ref)))
        # bf16 MXU inputs vs. f32 reference -> loose tolerance.
        assert err < 5e-2, (name, err)

    print("KERNEL_OK")
</pallas_src>

<mosaic_0001>
module attributes {stable_mosaic.version = 11 : i64} {
  func.func @_mlp_resident_kernel(%arg0: i32, %arg1: memref<16x64xf32, #tpu.memory_space<vmem>>, %arg2: memref<64x256xbf16, #tpu.memory_space<vmem>>, %arg3: memref<1x256xf32, #tpu.memory_space<vmem>>, %arg4: memref<256x64xbf16, #tpu.memory_space<vmem>>, %arg5: memref<1x64xf32, #tpu.memory_space<vmem>>, %arg6: memref<16x64xf32, #tpu.memory_space<vmem>>) attributes {dimension_semantics = [#tpu.dimension_semantics<parallel>], iteration_bounds = array<i64: 1>, scalar_prefetch = 0 : i64, scratch_operands = 0 : i64, tpu.core_type = #tpu.core_type<tc>, window_params = [{transform_indices = @transform_0, window_bounds = array<i64: 16, 64>}, {pipeline_mode = #tpu.pipeline_mode<synchronous>, transform_indices = @transform_1, window_bounds = array<i64: 64, 256>}, {pipeline_mode = #tpu.pipeline_mode<synchronous>, transform_indices = @transform_2, window_bounds = array<i64: 1, 256>}, {pipeline_mode = #tpu.pipeline_mode<synchronous>, transform_indices = @transform_3, window_bounds = array<i64: 256, 64>}, {pipeline_mode = #tpu.pipeline_mode<synchronous>, transform_indices = @transform_4, window_bounds = array<i64: 1, 64>}, {transform_indices = @transform_5, window_bounds = array<i64: 16, 64>}]} {
    %c0 = arith.constant 0 : index
    %c0_0 = arith.constant 0 : index
    %0 = vector.load %arg1[%c0, %c0_0] : memref<16x64xf32, #tpu.memory_space<vmem>>, vector<16x64xf32>
    %1 = arith.truncf %0 : vector<16x64xf32> to vector<16x64xbf16>
    %c0_1 = arith.constant 0 : index
    %c0_2 = arith.constant 0 : index
    %2 = vector.load %arg2[%c0_1, %c0_2] : memref<64x256xbf16, #tpu.memory_space<vmem>>, vector<64x256xbf16>
    %cst = arith.constant dense<0.000000e+00> : vector<16x256xf32>
    %3 = tpu.matmul %1, %2, %cst {dimension_numbers = #tpu.dot_dimension_numbers<[1], [0], [0], [1], [0, 0, 1, 1], [], []>} : vector<16x64xbf16>, vector<64x256xbf16>, vector<16x256xf32> -> vector<16x256xf32>
    %c0_3 = arith.constant 0 : index
    %c0_4 = arith.constant 0 : index
    %4 = vector.load %arg3[%c0_3, %c0_4] : memref<1x256xf32, #tpu.memory_space<vmem>>, vector<1x256xf32>
    %5 = vector.broadcast %4 : vector<1x256xf32> to vector<16x256xf32>
    %6 = arith.addf %3, %5 : vector<16x256xf32>
    %cst_5 = arith.constant 5.000000e-01 : f32
    %7 = vector.broadcast %cst_5 : f32 to vector<16x256xf32>
    %8 = arith.mulf %7, %6 : vector<16x256xf32>
    %9 = arith.mulf %6, %6 : vector<16x256xf32>
    %10 = arith.mulf %9, %6 : vector<16x256xf32>
    %cst_6 = arith.constant 4.471500e-02 : f32
    %11 = vector.broadcast %cst_6 : f32 to vector<16x256xf32>
    %12 = arith.mulf %11, %10 : vector<16x256xf32>
    %13 = arith.addf %6, %12 : vector<16x256xf32>
    %cst_7 = arith.constant 0.797884583 : f32
    %14 = vector.broadcast %cst_7 : f32 to vector<16x256xf32>
    %15 = arith.mulf %14, %13 : vector<16x256xf32>
    %16 = math.tanh %15 : vector<16x256xf32>
    %cst_8 = arith.constant 1.000000e+00 : f32
    %17 = vector.broadcast %cst_8 : f32 to vector<16x256xf32>
    %18 = arith.addf %17, %16 : vector<16x256xf32>
    %19 = arith.mulf %8, %18 : vector<16x256xf32>
    %20 = arith.truncf %19 : vector<16x256xf32> to vector<16x256xbf16>
    %c0_9 = arith.constant 0 : index
    %c0_10 = arith.constant 0 : index
    %21 = vector.load %arg4[%c0_9, %c0_10] : memref<256x64xbf16, #tpu.memory_space<vmem>>, vector<256x64xbf16>
    %cst_11 = arith.constant dense<0.000000e+00> : vector<16x64xf32>
    %22 = tpu.matmul %20, %21, %cst_11 {dimension_numbers = #tpu.dot_dimension_numbers<[1], [0], [0], [1], [0, 0, 1, 1], [], []>} : vector<16x256xbf16>, vector<256x64xbf16>, vector<16x64xf32> -> vector<16x64xf32>
    %c0_12 = arith.constant 0 : index
    %c0_13 = arith.constant 0 : index
    %23 = vector.load %arg5[%c0_12, %c0_13] : memref<1x64xf32, #tpu.memory_space<vmem>>, vector<1x64xf32>
    %24 = vector.broadcast %23 : vector<1x64xf32> to vector<16x64xf32>
    %25 = arith.addf %22, %24 : vector<16x64xf32>
    %c0_14 = arith.constant 0 : index
    %c0_15 = arith.constant 0 : index
    %26 = vector.load %arg6[%c0_14, %c0_15] : memref<16x64xf32, #tpu.memory_space<vmem>>, vector<16x64xf32>
    tpu.vector_store %arg6[%c0_14, %c0_15], %25 {strides = array<i32>} : memref<16x64xf32, #tpu.memory_space<vmem>>, vector<16x64xf32>,
    return
  }
  func.func @transform_0(%arg0: i32) -> (i32, i32) {
    %c0_i32 = arith.constant 0 : i32
    %c0_i32_0 = arith.constant 0 : i32
    return %arg0, %c0_i32 : i32, i32
  }
  func.func @transform_1(%arg0: i32) -> (i32, i32) {
    %c0_i32 = arith.constant 0 : i32
    %c0_i32_0 = arith.constant 0 : i32
    %c0_i32_1 = arith.constant 0 : i32
    return %c0_i32, %c0_i32_0 : i32, i32
  }
  func.func @transform_2(%arg0: i32) -> (i32, i32) {
    %c0_i32 = arith.constant 0 : i32
    %c0_i32_0 = arith.constant 0 : i32
    %c0_i32_1 = arith.constant 0 : i32
    return %c0_i32, %c0_i32_0 : i32, i32
  }
  func.func @transform_3(%arg0: i32) -> (i32, i32) {
    %c0_i32 = arith.constant 0 : i32
    %c0_i32_0 = arith.constant 0 : i32
    %c0_i32_1 = arith.constant 0 : i32
    return %c0_i32, %c0_i32_0 : i32, i32
  }
  func.func @transform_4(%arg0: i32) -> (i32, i32) {
    %c0_i32 = arith.constant 0 : i32
    %c0_i32_0 = arith.constant 0 : i32
    %c0_i32_1 = arith.constant 0 : i32
    return %c0_i32, %c0_i32_0 : i32, i32
  }
  func.func @transform_5(%arg0: i32) -> (i32, i32) {
    %c0_i32 = arith.constant 0 : i32
    %c0_i32_0 = arith.constant 0 : i32
    return %arg0, %c0_i32 : i32, i32
  }
}

</mosaic_0001>

<bundles_post_ra>
// kernel: mlp_forward.1
= control target key start
LH: loop header
LB: loop body
LE: loop exit
PB: predicated region body
PF: predicated region fallthrough
CT: control target
= control target key end

     0   :  { %v474_v2 = vmov 0   ;;  %vm85_vm0 = vcmask 523264   ;;  %s598_s0 = inlined_call_operand.vmem [shape: f32[16,64], index: 0, kind: input, shape index: {}]   ;;  %s599_s1 = inlined_call_operand.vmem [shape: bf16[64,256], index: 1, kind: input, shape index: {}]   ;;  %s600_s2 = inlined_call_operand.vmem [shape: f32[1,256], index: 2, kind: input, shape index: {}]   ;;  %s601_s3 = inlined_call_operand.vmem [shape: bf16[256,64], index: 3, kind: input, shape index: {}]   ;;  %s602_s4 = inlined_call_operand.vmem [shape: f32[1,64], index: 4, kind: input, shape index: {}]   ;;  %s603_s5 = inlined_call_operand.hbm [shape: f32[16,64], index: 5, kind: output, shape index: {}]  }
   0x1   :  { %v416_v0 = vld [vmem:[%s599_s1 + $0x34] ss:$8 sps:$4 sm:$0xff]   ;;  %v418_v1 = vld [vmem:[%s599_s1 + $0x30] ss:$8 sps:$4 sm:$0xff]   ;;  %121 = vmatprep.mubr.bf16.mxu0 %v474_v2  ;;  %v419_v3 = vld [vmem:[%s599_s1 + $0x24] ss:$8 sps:$4 sm:$0xff]  }
   0x2   :  { %97 = vmatprep.subr.bf16.mxu0 %v416_v0  ;;  %v421_v4 = vld [vmem:[%s599_s1 + $0x20] ss:$8 sps:$4 sm:$0xff]   ;;  %v422_v5 = vld [vmem:[%s599_s1 + $0x14] ss:$8 sps:$4 sm:$0xff]   ;;  %v424_v6 = vld [vmem:[%s599_s1 + $0x10] ss:$8 sps:$4 sm:$0xff]  }
   0x3   :  { %98 = vmatpush1.bf16.msra.mxu0 %v418_v1  ;;  %v425_v7 = vld [vmem:[%s599_s1 + $0x4] ss:$8 sps:$4 sm:$0xff]   ;;  %v427_v8 = vld [vmem:[%s599_s1] ss:$8 sps:$4 sm:$0xff]  }
   0x4   :  { %99 = vmatprep.subr.bf16.mxu0 %v419_v3  ;;  %v22_v9 = vld [vmem:[%s598_s0] sm:$0xff]  ;;  %v23_v10 = vld [vmem:[%s598_s0 + $0x8] sm:$0xff] }
   0x5   :  { %v24_v11 = vpack.c.bf16 %v23_v10, %v22_v9 }
   0x7   :  { %100 = vmatpush1.bf16.msra.mxu0 %v421_v4 }
   0x8   :  { %101 = vmatprep.subr.bf16.mxu0 %v422_v5 }
   0xb   :  { %102 = vmatpush1.bf16.msra.mxu0 %v424_v6 }
   0xc   :  { %103 = vmatprep.subr.bf16.mxu0 %v425_v7 }
   0xf   :  { %104 = vmatpush1.bf16.msra.mxu0 %v427_v8 }
  0x10   :  { %10 = vsyncpa [#allocation3], 0  ;;  %v428_v12 = vld [vmem:[%s601_s3 + $0x78] sm:$0xff]   ;;  %v430_v14 = vld [vmem:[%s601_s3 + $0x70] sm:$0xff]   ;;  %v35_v28 = vlaneseq  ;;  %s475_s18 = smov [#allocation2]  }
  0x11   :  { %v429_v13 = vld [vmem:[%s601_s3 + $0x38] sm:$0xff]   ;;  %390 = vmatprep.subr.bf16.mxu1 %v428_v12  ;;  %v431_v15 = vld [vmem:[%s601_s3 + $0x30] sm:$0xff]   ;;  %v432_v16 = vld [vmem:[%s601_s3 + $0x68] sm:$0xff]   ;;  %s353_s19 = sshll.u32 %s475_s18, 4  ;;  %s354_s19 = int_to_ptr.vmem [resolvable:$true] %s353_s19 }
  0x12   :  { %372 = vmatmul.mubr.msk.bf16.vlgmr.msra.gmra.mxu0 %vm85_vm0, %v24_v11  ;;  %391 = vmatpush3.bf16.msra.mxu1 %v429_v13  ;;  %v433_v17 = vld [vmem:[%s601_s3 + $0x28] sm:$0xff]   ;;  %v434_v18 = vld [vmem:[%s601_s3 + $0x60] sm:$0xff]   ;;  %v436_v20 = vld [vmem:[%s601_s3 + $0x58] sm:$0xff]   ;;  %v36_v29 = vshrl.u32 %v35_v28, 7  ;;  %s452_s20 = scalar_lea.vmem %s354_s19, 256  ;;  %p457_p1 = scmp.lt.s32.totalorder %s354_s19, %s354_s19 }
  0x13   :  { %392 = vmatprep.subr.bf16.mxu1 %v430_v14  ;;  %v435_v19 = vld [vmem:[%s601_s3 + $0x20] sm:$0xff]   ;;  %v437_v21 = vld [vmem:[%s601_s3 + $0x18] sm:$0xff]   ;;  %v438_v22 = vld [vmem:[%s601_s3 + $0x50] sm:$0xff]   ;;  %p453_p0 = scmp.ne.s32.totalorder %s354_s19, %s452_s20  ;;  %p458_p2 = scmp.lt.s32.totalorder %s452_s20, %s452_s20 }
  0x14   :  { %v439_v23 = vld [vmem:[%s601_s3 + $0x10] sm:$0xff]   ;;  %v440_v24 = vld [vmem:[%s601_s3 + $0x48] sm:$0xff]   ;;  %v442_v26 = vld [vmem:[%s601_s3 + $0x40] sm:$0xff]   ;;  %v37_v30 = vsub.s32 0, %v36_v29  ;;  %v41_v32 = vsub.s32 1, %v36_v29 }
  0x15   :  { %v441_v25 = vld [vmem:[%s601_s3 + $0x8] sm:$0xff]   ;;  %v443_v27 = vld [vmem:[%s601_s3] sm:$0xff]   ;;  %p459_p3 = por %p458_p2, %p457_p1 }
  0x16   :  { %393 = vmatpush3.bf16.msra.mxu1 %v431_v15  ;;  %v33_v31 = vld [vmem:[%s600_s2] sm:$0x3] }
  0x17   :  { %394 = vmatprep.subr.bf16.mxu1 %v432_v16  ;;  %v38_v33 = vrot.slane %v33_v31, %v37_v30  ;;  %v42_v34 = vrot.slane %v33_v31, %v41_v32  ;;  %p460_p4 = pnand %p459_p3, %p453_p0 }
  0x1a   :  { %395 = vmatpush3.bf16.msra.mxu1 %v433_v17 }
  0x1b   :  { %396 = vmatprep.subr.bf16.mxu1 %v434_v18  ;;  %v373_v18 = vld [vmem:[%s602_s4] ss:$0 sm:$0xff] }
  0x1e   :  { %397 = vmatpush3.bf16.msra.mxu1 %v435_v19 }
  0x1f   :  { %398 = vmatprep.subr.bf16.mxu1 %v436_v20 }
  0x22   :  { %399 = vmatpush3.bf16.msra.mxu1 %v437_v21 }
  0x23   :  { %400 = vmatprep.subr.bf16.mxu1 %v438_v22 }
  0x26   :  { %401 = vmatpush3.bf16.msra.mxu1 %v439_v23 }
  0x27   :  { %402 = vmatprep.subr.bf16.mxu1 %v440_v24 }
  0x2a   :  { %403 = vmatpush3.bf16.msra.mxu1 %v441_v25 }
  0x2b   :  { %404 = vmatprep.subr.bf16.mxu1 %v442_v26 }
  0x2e   :  { %405 = vmatpush3.bf16.msra.mxu1 %v443_v27 }
  0xd2   :  { %v123_v35 = vpop.f32.mrf.mxu0 }
  0xd3   :  { %v124_v36 = vadd.f32 %v123_v35, %v38_v33 }
  0xd4   :  { %v125_v37 = vpop.f32.mrf.mxu0 }
  0xd5   :  { %v136_v38 = vmul.f32 %v124_v36, %v124_v36  ;;  %v126_v39 = vadd.f32 %v125_v37, %v42_v34  ;;  %v132_v10 = vmul.f32 0.5, %v124_v36 }
  0xd6   :  { %v127_v40 = vpop.f32.mrf.mxu0 }
  0xd7   :  { %v140_v41 = vmul.f32 %v136_v38, %v124_v36  ;;  %v137_v42 = vmul.f32 %v126_v39, %v126_v39  ;;  %v128_v43 = vadd.f32 %v127_v40, %v38_v33  ;;  %v133_v7 = vmul.f32 0.5, %v126_v39 }
  0xd8   :  { %v129_v44 = vpop.f32.mrf.mxu0 }
  0xd9   :  { %v144_v45 = vmul.f32 0.044715, %v140_v41  ;;  %v141_v46 = vmul.f32 %v137_v42, %v126_v39  ;;  %v138_v47 = vmul.f32 %v128_v43, %v128_v43  ;;  %v130_v48 = vadd.f32 %v129_v44, %v42_v34 }
  0xda   :  { %v134_v5 = vmul.f32 0.5, %v128_v43 }
  0xdb   :  { %v148_v49 = vadd.f32 %v144_v45, %v124_v36  ;;  %v145_v50 = vmul.f32 0.044715, %v141_v46  ;;  %v142_v51 = vmul.f32 %v138_v47, %v128_v43  ;;  %v139_v52 = vmul.f32 %v130_v48, %v130_v48 }
  0xdc   :  { %v135_v8 = vmul.f32 0.5, %v130_v48 }
  0xdd   :  { %v146_v53 = vmul.f32 0.044715, %v142_v51  ;;  %v143_v54 = vmul.f32 %v139_v52, %v130_v48  ;;  %v149_v55 = vadd.f32 %v145_v50, %v126_v39  ;;  %v152_v56 = vmul.f32 0.7978846, %v148_v49 }
  0xdf   :  { %v150_v57 = vadd.f32 %v146_v53, %v128_v43  ;;  %v147_v58 = vmul.f32 0.044715, %v143_v54  ;;  %v153_v59 = vmul.f32 0.7978846, %v149_v55 }
  0xe1   :  { %v154_v60 = vmul.f32 0.7978846, %v150_v57  ;;  %v151_v61 = vadd.f32 %v147_v58, %v130_v48  ;;  %444 = vtanh.f32 %v153_v59 }
  0xe2   :  { %446 = vtanh.f32 %v152_v56 }
  0xe3   :  { %448 = vtanh.f32 %v154_v60  ;;  %v155_v62 = vmul.f32 0.7978846, %v151_v61 }
  0xe5   :  { %450 = vtanh.f32 %v155_v62 }
  0xee   :  { %v445_v63 = vpop.eup %444 }
  0xef   :  { %v447_v0 = vpop.eup %446  ;;  %v161_v2 = vadd.f32 1.0, %v445_v63 }
  0xf0   :  { %v449_v1 = vpop.eup %448  ;;  %v160_v6 = vadd.f32 1.0, %v447_v0 }
  0xf1   :  { %v162_v3 = vadd.f32 1.0, %v449_v1  ;;  %v165_v12 = vmul.f32 %v161_v2, %v133_v7 }
  0xf2   :  { %v451_v4 = vpop.eup %450  ;;  %v164_v14 = vmul.f32 %v160_v6, %v132_v10 }
  0xf3   :  { %v163_v9 = vadd.f32 1.0, %v451_v4  ;;  %v166_v11 = vmul.f32 %v162_v3, %v134_v5 }
  0xf5   :  { %v167_v13 = vmul.f32 %v163_v9, %v135_v8  ;;  %v168_v16 = vpack.c.bf16 %v166_v11, %v164_v14 }
  0xf7   :  { %v169_v15 = vpack.c.bf16 %v167_v13, %v165_v12 }
  0xf9   :  { %337 = vmatprep.mubr.bf16.mxu1 %v169_v15 }
  0xfa   :  { %338 = vmatmul.mubr.bf16.vlgmr.msra.gmra.mxu1 %v168_v16 }
 0x1ba   :  { %v406_v17 = vpop.f32.mrf.mxu1 }
 0x1bc   :  { %v407_v19 = vpop.f32.mrf.mxu1 }
 0x1bd   :  { %v408_v20 = vadd.f32 %v407_v19, %v406_v17 }
 0x1be   :  { %v409_v21 = vpop.f32.mrf.mxu1 }
 0x1bf   :  { %v340_v22 = vadd.f32 %v408_v20, %v373_v18 }
 0x1c0   :  { %v410_v23 = vpop.f32.mrf.mxu1 }
 0x1c1   :  { %346 = vst.msk [vmem:[#allocation2] sm:$0xff] %vm85_vm0, %v340_v22  ;;  %v411_v24 = vadd.f32 %v410_v23, %v409_v21 }
 0x1c3   :  { %v343_v25 = vadd.f32 %v411_v24, %v373_v18 }
 0x1c5   :  { %347 = vst.msk [vmem:[#allocation2 + $0x8] sm:$0xff] %vm85_vm0, %v343_v25 }
 0x1c6   :  { %463 = shalt.err (!%p460_p4)
}
 0x1c7   :  { %s476_s4 = smov 128   ;;  %s477_s21 = smov 8  }
 0x1c8   :  { %359 = dma.vmem_to_hbm [thread:$0]  %s354_s19, 256, %s603_s5, [#allocation3], %s476_s4, %s476_s4, %s477_s21  }
 0x1c9   :  { %472 = dma.done.wait [#allocation3], 256  }
 0x1ca   :  { %473 = vsyncadd [#allocation3], 4294967040 }
 0x1cb   :  { %363 = vsyncpa [#allocation3], 1 }

</bundles_post_ra>
